<compile_context>
chip_gen: v7x
topology: tpu7x:2x2x1
jax: 0.10.0
libtpu: 0.0.40
codegen_flags: <defaults>
</compile_context>

<pallas_src>
import functools
import math

import jax
import jax.numpy as jnp
from jax.experimental import pallas as pl
from jax.experimental.pallas import tpu as pltpu

_LANE = 128
_TARGET_BLOCK_BYTES = 8 * 1024 * 1024  # ~8 MiB input tile per grid step


def _batch_sum_scale_kernel(x_ref, o_ref, acc_ref, *, n_valid, tn, kps,
                            needs_mask):
    # x_ref:   (tb, tn)      input tile (native dtype), tn elements of each row
    # o_ref:   (1, tb, 1)    partial output block for (split, batch-tile)
    # acc_ref: (tb, 1) f32   running per-row partial sums (resident over k)
    s = pl.program_id(0)   # reduction split (parallel, for v7x megacore)
    b = pl.program_id(1)   # batch tile     (parallel)
    k = pl.program_id(2)   # reduction step (arbitrary)

    @pl.when(k == 0)
    def _():
        acc_ref[...] = jnp.zeros_like(acc_ref)

    if needs_mask:
        # Mask against the *logical* flat element offset so that (a) the lane
        # tail of the last real block and (b) clamped phantom blocks of the
        # second split contribute exactly zero.
        blk = s * kps + k
        off = blk * tn
        is_full = off + tn <= n_valid

        @pl.when(is_full)
        def _():
            acc_ref[...] += jnp.sum(x_ref[...].astype(jnp.float32),
                                    axis=1, keepdims=True)

        @pl.when(jnp.logical_not(is_full))
        def _():
            lane = jax.lax.broadcasted_iota(jnp.int32, x_ref.shape, 1)
            xb = jnp.where(off + lane < n_valid,
                           x_ref[...].astype(jnp.float32), 0.0)
            acc_ref[...] += jnp.sum(xb, axis=1, keepdims=True)
    else:
        acc_ref[...] += jnp.sum(x_ref[...].astype(jnp.float32),
                                axis=1, keepdims=True)

    @pl.when(k == kps - 1)
    def _():
        tb = acc_ref.shape[0]
        idx = b * tb + jax.lax.broadcasted_iota(jnp.int32, (tb, 1), 0)
        # scale * (partial_0 + partial_1) == scale*partial_0 + scale*partial_1,
        # so applying the index scale to each split's partial is exact.
        o_ref[0] = acc_ref[...] * idx.astype(jnp.float32)


def pt_module_forward(x, *, target_block_bytes=_TARGET_BLOCK_BYTES):
    """x: (B, ...) -> (B,) with out[i] = sum(x[i]) * i."""
    B = x.shape[0]
    N = int(math.prod(x.shape[1:]))

    # Free reshape (trailing-dim merge); keep native dtype -> no extra HBM pass.
    xf = jnp.reshape(x, (B, N))
    itemsize = jnp.dtype(xf.dtype).itemsize
    # sublane packing granularity: 8 for 32-bit, 16 for 16-bit, 32 for 8-bit
    sub_g = max(8, 8 * (4 // max(itemsize, 1)))

    # --- tile selection (~target_block_bytes per input block) ---------------
    per_row_bytes = N * itemsize
    if per_row_bytes <= target_block_bytes:
        tn = N                                      # whole feature row / block
        grid_k = 1
        tb_raw = max(1, target_block_bytes // max(per_row_bytes, 1))
        if tb_raw >= B:
            tb = B                                  # full batch dim is allowed
        else:
            tb = max(sub_g, (tb_raw // sub_g) * sub_g)
    else:
        tb = B if B <= sub_g else sub_g
        tn = max(_LANE,
                 (target_block_bytes // (tb * itemsize)) // _LANE * _LANE)
        grid_k = -(-N // tn)

    grid_b = -(-B // tb)

    # v7x: guarantee >=2 blocks on a parallel axis when the batch axis
    # collapses, by splitting the reduction axis across a leading parallel
    # axis of size 2 (each split writes a partial, combined below).
    n_split = 2 if (grid_b == 1 and grid_k >= 2) else 1
    kps = -(-grid_k // n_split)

    needs_mask = (n_split * kps * tn != N)
    b_out = grid_b * tb
    grid_k_last = grid_k - 1

    kernel = functools.partial(_batch_sum_scale_kernel,
                               n_valid=N, tn=tn, kps=kps,
                               needs_mask=needs_mask)

    partials = pl.pallas_call(
        kernel,
        out_shape=jax.ShapeDtypeStruct((n_split, b_out, 1), jnp.float32),
        grid=(n_split, grid_b, kps),
        in_specs=[
            pl.BlockSpec(
                (tb, tn),
                # clamp so phantom blocks of the 2nd split stay in-bounds
                # (their contribution is zeroed by the in-kernel mask).
                lambda s, b, k: (b, jnp.minimum(s * kps + k, grid_k_last)),
            ),
        ],
        out_specs=pl.BlockSpec((1, tb, 1), lambda s, b, k: (s, b, 0)),
        scratch_shapes=[pltpu.VMEM((tb, 1), jnp.float32)],
        compiler_params=pltpu.CompilerParams(
            dimension_semantics=("parallel", "parallel", "arbitrary"),
            vmem_limit_bytes=48 * 1024 * 1024,   # v7x-safe (64 MiB physical)
        ),
    )(xf)

    out = jnp.sum(partials, axis=0)[:B, 0]
    if jnp.issubdtype(x.dtype, jnp.floating):
        out = out.astype(x.dtype)
    return out


if __name__ == "__main__":
    key = jax.random.PRNGKey(0)
    B, C, H, W = 2, 4, 16, 16
    x = jax.random.normal(key, (B, C, H, W), dtype=jnp.float32)

    out = jax.jit(pt_module_forward)(x)
    out = jax.block_until_ready(out)

    # reference check (plain JAX mirror of the PyTorch loop)
    ref = jnp.stack([jnp.sum(x[i]) * i for i in range(B)])
    assert out.shape == (B,), out.shape
    assert jnp.allclose(out, ref, atol=1e-5, rtol=1e-5), (out, ref)

    print("KERNEL_OK")
</pallas_src>

<mosaic_0001>
module attributes {stable_mosaic.version = 11 : i64} {
  func.func @_batch_sum_scale_kernel(%arg0: i32, %arg1: i32, %arg2: i32, %arg3: memref<2x1024xf32, #tpu.memory_space<vmem>>, %arg4: memref<1x2x1xf32, #tpu.memory_space<vmem>>, %arg5: memref<2x1xf32, #tpu.memory_space<vmem>>) attributes {dimension_semantics = [#tpu.dimension_semantics<parallel>, #tpu.dimension_semantics<parallel>, #tpu.dimension_semantics<arbitrary>], iteration_bounds = array<i64: 1, 1, 1>, scalar_prefetch = 0 : i64, scratch_operands = 1 : i64, tpu.core_type = #tpu.core_type<tc>, window_params = [{transform_indices = @transform_0, window_bounds = array<i64: 2, 1024>}, {transform_indices = @transform_1, window_bounds = array<i64: 1, 2, 1>}]} {
    %c0_i32 = arith.constant 0 : i32
    %0 = arith.cmpi eq, %arg2, %c0_i32 : i32
    %1 = arith.extui %0 : i1 to i32
    %c0_i32_0 = arith.constant 0 : i32
    %2 = arith.cmpi ne, %1, %c0_i32_0 : i32
    scf.if %2 {
      %cst_8 = arith.constant 0.000000e+00 : f32
      %12 = vector.broadcast %cst_8 : f32 to vector<2x1xf32>
      %c0_9 = arith.constant 0 : index
      %c0_10 = arith.constant 0 : index
      %13 = vector.load %arg5[%c0_9, %c0_10] : memref<2x1xf32, #tpu.memory_space<vmem>>, vector<2x1xf32>
      tpu.vector_store %arg5[%c0_9, %c0_10], %12 {strides = array<i32>} : memref<2x1xf32, #tpu.memory_space<vmem>>, vector<2x1xf32>,
    } else {
    }
    %c0 = arith.constant 0 : index
    %c0_1 = arith.constant 0 : index
    %3 = vector.load %arg5[%c0, %c0_1] : memref<2x1xf32, #tpu.memory_space<vmem>>, vector<2x1xf32>
    %c0_2 = arith.constant 0 : index
    %c0_3 = arith.constant 0 : index
    %4 = vector.load %arg3[%c0_2, %c0_3] : memref<2x1024xf32, #tpu.memory_space<vmem>>, vector<2x1024xf32>
    %cst = arith.constant dense<0.000000e+00> : vector<2xf32>
    %5 = vector.multi_reduction <add>, %4, %cst [1] : vector<2x1024xf32> to vector<2xf32>
    %6 = vector.shape_cast %5 : vector<2xf32> to vector<2x1xf32>
    %7 = arith.addf %3, %6 : vector<2x1xf32>
    %c0_4 = arith.constant 0 : index
    %c0_5 = arith.constant 0 : index
    %8 = vector.load %arg5[%c0_4, %c0_5] : memref<2x1xf32, #tpu.memory_space<vmem>>, vector<2x1xf32>
    tpu.vector_store %arg5[%c0_4, %c0_5], %7 {strides = array<i32>} : memref<2x1xf32, #tpu.memory_space<vmem>>, vector<2x1xf32>,
    %c0_i32_6 = arith.constant 0 : i32
    %9 = arith.cmpi eq, %arg2, %c0_i32_6 : i32
    %10 = arith.extui %9 : i1 to i32
    %c0_i32_7 = arith.constant 0 : i32
    %11 = arith.cmpi ne, %10, %c0_i32_7 : i32
    scf.if %11 {
      %c2_i32 = arith.constant 2 : i32
      %12 = arith.muli %arg1, %c2_i32 : i32
      %13 = tpu.iota {dimensions = array<i32: 0>} : vector<2x1xi32>
      %14 = vector.broadcast %12 : i32 to vector<2x1xi32>
      %15 = arith.addi %14, %13 : vector<2x1xi32>
      %c0_8 = arith.constant 0 : index
      %c0_9 = arith.constant 0 : index
      %16 = vector.load %arg5[%c0_8, %c0_9] : memref<2x1xf32, #tpu.memory_space<vmem>>, vector<2x1xf32>
      %17 = arith.sitofp %15 : vector<2x1xi32> to vector<2x1xf32>
      %18 = arith.mulf %16, %17 : vector<2x1xf32>
      %c0_10 = arith.constant 0 : index
      %c0_11 = arith.constant 0 : index
      %c0_12 = arith.constant 0 : index
      %19 = vector.load %arg4[%c0_10, %c0_11, %c0_12] : memref<1x2x1xf32, #tpu.memory_space<vmem>>, vector<1x2x1xf32>
      %20 = vector.shape_cast %19 : vector<1x2x1xf32> to vector<2x1xf32>
      %21 = vector.shape_cast %18 : vector<2x1xf32> to vector<1x2x1xf32>
      tpu.vector_store %arg4[%c0_10, %c0_11, %c0_12], %21 {strides = array<i32>} : memref<1x2x1xf32, #tpu.memory_space<vmem>>, vector<1x2x1xf32>,
    } else {
    }
    return
  }
  func.func @transform_0(%arg0: i32, %arg1: i32, %arg2: i32) -> (i32, i32) {
    %c1_i32 = arith.constant 1 : i32
    %0 = arith.muli %arg0, %c1_i32 : i32
    %1 = arith.addi %0, %arg2 : i32
    %c0_i32 = arith.constant 0 : i32
    %2 = arith.minsi %1, %c0_i32 : i32
    %c0_i32_0 = arith.constant 0 : i32
    return %arg1, %2 : i32, i32
  }
  func.func @transform_1(%arg0: i32, %arg1: i32, %arg2: i32) -> (i32, i32, i32) {
    %c0_i32 = arith.constant 0 : i32
    %c0_i32_0 = arith.constant 0 : i32
    return %arg0, %arg1, %c0_i32 : i32, i32, i32
  }
}

</mosaic_0001>

<bundles_post_ra>
// kernel: pt_module_forward.1
= control target key start
LH: loop header
LB: loop body
LE: loop exit
PB: predicated region body
PF: predicated region fallthrough
CT: control target
= control target key end

     0   :  { %v55_v0 = vlaneseq  ;;  %vm44_vm0 = vcmask 1024   ;;  %v140_v1 = vmov 1983009808   ;;  %v141_v5 = vmov 0.0   ;;  %s172_s0 = inlined_call_operand.vmem [shape: f32[2,1024], index: 0, kind: input, shape index: {}]   ;;  %s173_s1 = inlined_call_operand.vmem [shape: f32[1,2,1], index: 1, kind: output, shape index: {}]  }
   0x1   :  { %v53_v2 = vunpack.c.l.s4 %v140_v1  ;;  %v47_v3 = vld [vmem:[%s172_s0] sm:$0xff]  ;;  %45 = vst.msk [vmem:[#allocation2] sm:$0x3] %vm44_vm0, %v141_v5  ;;  %v48_v9 = vld [vmem:[%s172_s0 + $0x8] sm:$0xff]  ;;  %vm93_vm1 = vcmask 1041408  }
   0x2   :  { %v56_v4 = vshrl.u32 %v55_v0, 7  ;;  %v51_v6 = vcombine.high %v47_v3, %v47_v3  ;;  %v68_v14 = vcombine.high %v48_v9, %v48_v9 }
   0x3   :  { %v54_v7 = vunpack.c.0.s8 %v53_v2 }
   0x4   :  { %v123_v37 = vcvt.s32.f32 %v56_v4 }
   0x5   :  { %v57_v8 = vsub.s32 %v54_v7, %v56_v4 }
   0x7   :  { %v58_v10 = vrot.slane %v47_v3, %v57_v8  ;;  %v65_v11 = vrot.slane %v51_v6, %v57_v8  ;;  %v75_v15 = vrot.slane %v48_v9, %v57_v8  ;;  %v82_v20 = vrot.slane %v68_v14, %v57_v8 }
   0x8   :  { %v46_v34 = vld [vmem:[#allocation2] sm:$0x3] }
   0x9   :  { %v66_v12 = vcombine.high %v58_v10, %v58_v10  ;;  %v67_v13 = vcombine.high %v65_v11, %v65_v11  ;;  %v94_v16 = vsel %vm93_vm1, %v58_v10, 0.0  ;;  %v97_v18 = vsel %vm93_vm1, %v65_v11, 0.0 }
   0xa   :  { %v83_v21 = vcombine.high %v75_v15, %v75_v15  ;;  %v101_v24 = vsel %vm93_vm1, %v75_v15, 0.0  ;;  %v84_v26 = vcombine.high %v82_v20, %v82_v20  ;;  %v105_v29 = vsel %vm93_vm1, %v82_v20, 0.0 }
   0xb   :  { %v95_v17 = vsel %vm93_vm1, %v66_v12, 0.0  ;;  %v99_v22 = vsel %vm93_vm1, %v67_v13, 0.0 }
   0xc   :  { %v96_v19 = vadd.f32 %v95_v17, %v94_v16  ;;  %v103_v27 = vsel %vm93_vm1, %v83_v21, 0.0  ;;  %v107_v31 = vsel %vm93_vm1, %v84_v26, 0.0 }
   0xe   :  { %v98_v23 = vadd.f32 %v97_v18, %v96_v19 }
  0x10   :  { %v100_v25 = vadd.f32 %v99_v22, %v98_v23 }
  0x12   :  { %v102_v28 = vadd.f32 %v101_v24, %v100_v25 }
  0x14   :  { %v104_v30 = vadd.f32 %v103_v27, %v102_v28 }
  0x16   :  { %v106_v32 = vadd.f32 %v105_v29, %v104_v30 }
  0x18   :  { %v108_v33 = vadd.f32 %v107_v31, %v106_v32 }
  0x1a   :  { %109 = vadd.xlane.f32.xlu0 %v108_v33 }
  0xa7   :  { %v110_v35 = vpop.xlane.xlu0 %109 }
  0xa8   :  { %v111_v36 = vadd.f32 %v110_v35, %v46_v34 }
  0xaa   :  { %113 = vst.msk [vmem:[#allocation2] sm:$0x3] %vm44_vm0, %v111_v36 }
  0xb1   :  { %v122_v38 = vld [vmem:[#allocation2] sm:$0x3] }
  0xb2   :  { %v124_v39 = vmul.f32 %v123_v37, %v122_v38 }
  0xb4   :  { %125 = vst.msk [vmem:[%s173_s1] sm:$0x3] %vm44_vm0, %v124_v39 }

</bundles_post_ra>
